<compile_context>
chip_gen: v7x
topology: tpu7x:2x2x1
jax: 0.10.0
libtpu: 0.0.40
codegen_flags: <defaults>
</compile_context>

<pallas_src>
import functools

import jax
import jax.numpy as jnp
from jax.experimental import pallas as pl
from jax.experimental.pallas import tpu as pltpu

_LANE = 128
_SUBLANE = 8


def _round_up(x, m):
    return (x + m - 1) // m * m


# ---------------------------------------------------------------------------
# Parameter preparation — done ONCE (param-init time), not per forward call.
# ---------------------------------------------------------------------------
def prepare_params(weight, bias):
    """Pad the OUT dim of (OUT, IN) weight / (OUT,) bias up to a lane multiple.

    Keeps the PyTorch layout (OUT, IN) so no transpose is ever materialized.
    Returns (weight_padded, bias_padded_2d, out_features).
    """
    out_f, in_f = weight.shape
    del in_f
    out_pad = _round_up(out_f, _LANE)
    w_p = jnp.pad(weight, ((0, out_pad - out_f), (0, 0)))
    b_p = jnp.pad(bias, (0, out_pad - out_f)).reshape(1, out_pad)
    return w_p, b_p, out_f


# ---------------------------------------------------------------------------
# Kernels
# ---------------------------------------------------------------------------
def _linear_small_kernel(x_ref, w_ref, b_ref, o_ref):
    # x: (B, IN), w: (OUT_pad, IN) -> contract over IN (dim 1 of both); the MXU
    # consumes W in its native (OUT, IN) layout with f32 accumulation.
    acc = jax.lax.dot_general(
        x_ref[...], w_ref[...],
        (((1,), (1,)), ((), ())),
        preferred_element_type=jnp.float32,
    )
    o_ref[...] = (acc + b_ref[...]).astype(o_ref.dtype)


def _linear_tiled_kernel(x_ref, w_ref, b_ref, o_ref, acc_ref):
    k = pl.program_id(2)

    @pl.when(k == 0)
    def _():
        acc_ref[...] = jnp.zeros_like(acc_ref)

    acc_ref[...] += jax.lax.dot_general(
        x_ref[...], w_ref[...],
        (((1,), (1,)), ((), ())),
        preferred_element_type=jnp.float32,
    )

    # Bias added exactly once in the epilogue: keeps the inner K loop pure MXU
    # work and avoids re-broadcasting the bias every K step.
    @pl.when(k == pl.num_programs(2) - 1)
    def _():
        o_ref[...] = (acc_ref[...] + b_ref[...]).astype(o_ref.dtype)


# ---------------------------------------------------------------------------
# Drivers
# ---------------------------------------------------------------------------
def _linear_small(x, w, b):
    """Single-shot path: grid=(), whole arrays in VMEM, no pipeline overhead."""
    batch, _ = x.shape
    out_pad = w.shape[0]
    vmem = functools.partial(pl.BlockSpec, memory_space=pltpu.MemorySpace.VMEM)
    return pl.pallas_call(
        _linear_small_kernel,
        out_shape=jax.ShapeDtypeStruct((batch, out_pad), x.dtype),
        in_specs=[vmem(), vmem(), vmem()],
        out_specs=vmem(),
    )(x, w, b)


def _linear_tiled(x, w, b, *, tm=512, tn=512, tk=512):
    """M/N/K-tiled accumulator path for shapes that would not fit in VMEM.

    (512, 512, 512) f32 tiles -> ~7 MiB of double-buffered VMEM + 1 MiB f32
    accumulator, safely under the 16/32/32 MiB scoped limits of v5e/v6e/v7x
    (we raise the limit to 32 MiB explicitly; all three chips have >=64 MiB
    physical VMEM per core).
    """
    # TODO(synk): on v6e/v7x, casting x/w to bf16 (keeping f32 accumulation)
    # would ~2x MXU throughput and halve weight DMA; kept f32 to match the
    # PyTorch module's numerics exactly.
    m, k_dim = x.shape
    n = w.shape[0]
    tm = min(tm, _round_up(m, _SUBLANE))
    tn = min(tn, _round_up(n, _LANE))
    tk = min(tk, _round_up(k_dim, _LANE))
    m_pad = _round_up(m, tm)
    n_pad = _round_up(n, tn)
    k_pad = _round_up(k_dim, tk)
    if (m_pad, k_pad) != (m, k_dim):
        x = jnp.pad(x, ((0, m_pad - m), (0, k_pad - k_dim)))
    if (n_pad, k_pad) != (n, k_dim):
        w = jnp.pad(w, ((0, n_pad - n), (0, k_pad - k_dim)))
    if n_pad != n:
        b = jnp.pad(b, ((0, 0), (0, n_pad - n)))

    grid = (m_pad // tm, n_pad // tn, k_pad // tk)
    out = pl.pallas_call(
        _linear_tiled_kernel,
        out_shape=jax.ShapeDtypeStruct((m_pad, n_pad), x.dtype),
        grid_spec=pltpu.PrefetchScalarGridSpec(
            num_scalar_prefetch=0,
            grid=grid,
            in_specs=[
                pl.BlockSpec((tm, tk), lambda i, j, k: (i, k)),
                pl.BlockSpec((tn, tk), lambda i, j, k: (j, k)),
                # Bias block only depends on j -> reused (not re-DMA'd) across
                # the K axis.
                pl.BlockSpec((1, tn), lambda i, j, k: (0, j)),
            ],
            out_specs=pl.BlockSpec((tm, tn), lambda i, j, k: (i, j)),
            scratch_shapes=[pltpu.VMEM((tm, tn), jnp.float32)],
        ),
        compiler_params=pltpu.CompilerParams(
            # M/N parallel -> megacore sharding on v7x; K (reduction) last and
            # arbitrary because the output block is carried across it.
            dimension_semantics=("parallel", "parallel", "arbitrary"),
            vmem_limit_bytes=32 * 1024 * 1024,
        ),
    )(x, w, b)
    return out[:m]


def mlp_sim_forward(x, w_p, b_p, out_features, *, small_path_bytes=8 << 20):
    """Pallas implementation of MLP_Sim.forward using prepared (padded) params.

    x            : (B, ...) any trailing shape; flattened to (B, IN)
    w_p          : (OUT_pad, IN)  -- PyTorch (OUT, IN) weight, OUT zero-padded to 128-mult
    b_p          : (1, OUT_pad)
    out_features : true OUT (padding is sliced off)
    returns      : (B, OUT)
    """
    batch = x.shape[0]
    x_flat = x.reshape(batch, -1)                 # glue: x.view(x.size(0), -1)
    in_f = x_flat.shape[1]
    out_pad = w_p.shape[0]
    assert w_p.shape[1] == in_f, "flattened input dim must match in_features"

    itemsize = jnp.dtype(x_flat.dtype).itemsize
    footprint = (x_flat.size + w_p.size + b_p.size + batch * out_pad) * itemsize
    if footprint <= small_path_bytes:
        y_pad = _linear_small(x_flat, w_p, b_p)
    else:
        y_pad = _linear_tiled(x_flat, w_p, b_p)
    return y_pad[:, :out_features]


if __name__ == "__main__":
    key = jax.random.PRNGKey(0)
    k_x, k_w, k_b = jax.random.split(key, 3)

    # Module config: in_channel (= in_features after flatten) = 32, out_channel = 10.
    B, IN, OUT = 8, 32, 10
    # Input shaped (B, 4, 8) -> flattened to (B, 32), consistent with x.view(B, -1).
    x = jax.random.normal(k_x, (B, 4, 8), dtype=jnp.float32)

    # Deterministic parameter init (PyTorch-style uniform bounds ~ 1/sqrt(IN)).
    bound = 1.0 / jnp.sqrt(jnp.float32(IN))
    weight = jax.random.uniform(k_w, (OUT, IN), minval=-bound, maxval=bound,
                                dtype=jnp.float32)
    bias = jax.random.uniform(k_b, (OUT,), minval=-bound, maxval=bound,
                              dtype=jnp.float32)

    # Prepare (pad) the params ONCE — not per forward call.
    w_p, b_p, out_features = prepare_params(weight, bias)

    # --- small / demo path (grid=(), lane-dense padded output) -------------
    y = mlp_sim_forward(x, w_p, b_p, out_features)
    y = jax.block_until_ready(y)
    y_ref = x.reshape(B, -1) @ weight.T + bias
    assert y.shape == (B, OUT)
    assert jnp.allclose(y, y_ref, atol=1e-5, rtol=1e-5)

    # --- tiled accumulator path (forced) at a moderate size ----------------
    k1, k2, k3 = jax.random.split(jax.random.PRNGKey(1), 3)
    B2, IN2, OUT2 = 512, 1024, 512
    x2 = jax.random.normal(k1, (B2, IN2), dtype=jnp.float32)
    w2 = jax.random.normal(k2, (OUT2, IN2), dtype=jnp.float32) * 0.02
    b2 = jax.random.normal(k3, (OUT2,), dtype=jnp.float32)
    w2_p, b2_p, out2_f = prepare_params(w2, b2)
    y2 = mlp_sim_forward(x2, w2_p, b2_p, out2_f, small_path_bytes=0)  # force tiled
    y2 = jax.block_until_ready(y2)
    y2_ref = x2 @ w2.T + b2
    rel_err = jnp.max(jnp.abs(y2 - y2_ref)) / (jnp.max(jnp.abs(y2_ref)) + 1e-6)
    assert y2.shape == (B2, OUT2)
    assert rel_err < 2e-2

    print("KERNEL_OK")
</pallas_src>

<mosaic_0001>
module attributes {stable_mosaic.version = 11 : i64} {
  func.func @_linear_small_kernel(%arg0: memref<8x32xf32, #tpu.memory_space<vmem>>, %arg1: memref<128x32xf32, #tpu.memory_space<vmem>>, %arg2: memref<1x128xf32, #tpu.memory_space<vmem>>, %arg3: memref<8x128xf32, #tpu.memory_space<vmem>>) attributes {dimension_semantics = [], scalar_prefetch = 0 : i64, scratch_operands = 0 : i64, tpu.core_type = #tpu.core_type<tc>} {
    %c0 = arith.constant 0 : index
    %c0_0 = arith.constant 0 : index
    %0 = vector.load %arg0[%c0, %c0_0] : memref<8x32xf32, #tpu.memory_space<vmem>>, vector<8x32xf32>
    %c0_1 = arith.constant 0 : index
    %c0_2 = arith.constant 0 : index
    %1 = vector.load %arg1[%c0_1, %c0_2] : memref<128x32xf32, #tpu.memory_space<vmem>>, vector<128x32xf32>
    %cst = arith.constant dense<0.000000e+00> : vector<8x128xf32>
    %2 = tpu.matmul %0, %1, %cst {dimension_numbers = #tpu.dot_dimension_numbers<[1], [1], [0], [0], [0, 0, 1, 0], [], []>} : vector<8x32xf32>, vector<128x32xf32>, vector<8x128xf32> -> vector<8x128xf32>
    %c0_3 = arith.constant 0 : index
    %c0_4 = arith.constant 0 : index
    %3 = vector.load %arg2[%c0_3, %c0_4] : memref<1x128xf32, #tpu.memory_space<vmem>>, vector<1x128xf32>
    %4 = vector.broadcast %3 : vector<1x128xf32> to vector<8x128xf32>
    %5 = arith.addf %2, %4 : vector<8x128xf32>
    %c0_5 = arith.constant 0 : index
    %c0_6 = arith.constant 0 : index
    %6 = vector.load %arg3[%c0_5, %c0_6] : memref<8x128xf32, #tpu.memory_space<vmem>>, vector<8x128xf32>
    tpu.vector_store %arg3[%c0_5, %c0_6], %5 {strides = array<i32>} : memref<8x128xf32, #tpu.memory_space<vmem>>, vector<8x128xf32>,
    return
  }
}

</mosaic_0001>

<bundles_post_ra>
// kernel: tpu_custom_call.1
= control target key start
LH: loop header
LB: loop body
LE: loop exit
PB: predicated region body
PF: predicated region fallthrough
CT: control target
= control target key end

     0   :  { %vm39_vm0 = vcmask 261120   ;;  %v306_v2 = vmov 0.0|0.0   ;;  %vm307_vm2 = vmmov 0   ;;  %v308_v5 = vmov 0.0   ;;  %s419_s0 = inlined_call_operand.vmem [shape: f32[8,32], index: 0, kind: input, shape index: {}]   ;;  %s420_s1 = inlined_call_operand.vmem [shape: f32[128,32], index: 1, kind: input, shape index: {}]   ;;  %s421_s2 = inlined_call_operand.vmem [shape: f32[1,128], index: 2, kind: input, shape index: {}]   ;;  %s422_s3 = inlined_call_operand.hbm [shape: f32[8,128], index: 3, kind: output, shape index: {}]  }
   0x1   :  { %v16_v0 = vld [vmem:[%s420_s1] sm:$0xff]  ;;  %v17_v1 = vld [vmem:[%s420_s1 + $0x8] sm:$0xff]  ;;  %246 = vmatprep.subr.bf16.mxu0 %v306_v2  ;;  %vm338_vm1 = vmpackc.low %vm39_vm0, %vm39_vm0  ;;  %243 = vmatprep.mubr.msk.f32.mxu0 %vm307_vm2, %v308_v5 }
   0x2   :  { %v247_v3 = vpack.c.bf16 %v17_v1, %v16_v0  ;;  %v18_v6 = vld [vmem:[%s420_s1 + $0x10] sm:$0xff]  ;;  %v19_v7 = vld [vmem:[%s420_s1 + $0x18] sm:$0xff] }
   0x4   :  { %249 = vmatpush3.bf16.xpose.msk.msra.mxu0 %vm338_vm1, %v247_v3 }
   0x5   :  { %250 = vmatprep.subr.bf16.mxu0 %v306_v2 }
   0x6   :  { %8 = vsyncpa [#allocation3], 0  ;;  %v251_v8 = vpack.c.bf16 %v19_v7, %v18_v6  ;;  %v20_v9 = vld [vmem:[%s420_s1 + $0x20] sm:$0xff]  ;;  %v21_v10 = vld [vmem:[%s420_s1 + $0x28] sm:$0xff]  ;;  %s309_s21 = smov [#allocation2]  }
   0x7   :  { %v255_v11 = vpack.c.bf16 %v21_v10, %v20_v9  ;;  %v22_v12 = vld [vmem:[%s420_s1 + $0x30] sm:$0xff]  ;;  %v23_v13 = vld [vmem:[%s420_s1 + $0x38] sm:$0xff]  ;;  %v24_v15 = vld [vmem:[%s420_s1 + $0x40] sm:$0xff]  ;;  %s168_s22 = sshll.u32 %s309_s21, 4  ;;  %s169_s22 = int_to_ptr.vmem [resolvable:$true] %s168_s22 }
   0x8   :  { %v259_v14 = vpack.c.bf16 %v23_v13, %v22_v12  ;;  %v25_v16 = vld [vmem:[%s420_s1 + $0x48] sm:$0xff]  ;;  %v26_v18 = vld [vmem:[%s420_s1 + $0x50] sm:$0xff]  ;;  %v27_v19 = vld [vmem:[%s420_s1 + $0x58] sm:$0xff]  ;;  %p287_p1 = scmp.lt.s32.totalorder %s169_s22, %s169_s22 }
   0x9   :  { %v263_v17 = vpack.c.bf16 %v25_v16, %v24_v15  ;;  %v267_v20 = vpack.c.bf16 %v27_v19, %v26_v18  ;;  %v28_v21 = vld [vmem:[%s420_s1 + $0x60] sm:$0xff]  ;;  %v29_v22 = vld [vmem:[%s420_s1 + $0x68] sm:$0xff]  ;;  %v30_v24 = vld [vmem:[%s420_s1 + $0x70] sm:$0xff] }
   0xa   :  { %v271_v23 = vpack.c.bf16 %v29_v22, %v28_v21  ;;  %v31_v25 = vld [vmem:[%s420_s1 + $0x78] sm:$0xff]  ;;  %v15_v27 = vld [vmem:[%s419_s0] sm:$0xff]  ;;  %s282_s1 = scalar_lea.vmem %s169_s22, 128 }
   0xb   :  { %v275_v26 = vpack.c.bf16 %v31_v25, %v30_v24  ;;  %v176_v28 = vld [vmem:[%s421_s2] ss:$0 sm:$0xff]  ;;  %p283_p0 = scmp.ne.s32.totalorder %s169_s22, %s282_s1  ;;  %p288_p2 = scmp.lt.s32.totalorder %s282_s1, %s282_s1 }
   0xc   :  { %253 = vmatpush3.bf16.xpose.msk.msra.mxu0 %vm338_vm1, %v251_v8 }
   0xd   :  { %254 = vmatprep.subr.bf16.mxu0 %v306_v2  ;;  %p289_p3 = por %p288_p2, %p287_p1 }
   0xf   :  { %p290_p4 = pnand %p289_p3, %p283_p0 }
  0x14   :  { %257 = vmatpush3.bf16.xpose.msk.msra.mxu0 %vm338_vm1, %v255_v11 }
  0x15   :  { %258 = vmatprep.subr.bf16.mxu0 %v306_v2 }
  0x1c   :  { %261 = vmatpush3.bf16.xpose.msk.msra.mxu0 %vm338_vm1, %v259_v14 }
  0x1d   :  { %262 = vmatprep.subr.bf16.mxu0 %v306_v2 }
  0x24   :  { %265 = vmatpush3.bf16.xpose.msk.msra.mxu0 %vm338_vm1, %v263_v17 }
  0x25   :  { %266 = vmatprep.subr.bf16.mxu0 %v306_v2 }
  0x2c   :  { %269 = vmatpush3.bf16.xpose.msk.msra.mxu0 %vm338_vm1, %v267_v20 }
  0x2d   :  { %270 = vmatprep.subr.bf16.mxu0 %v306_v2 }
  0x34   :  { %273 = vmatpush3.bf16.xpose.msk.msra.mxu0 %vm338_vm1, %v271_v23 }
  0x35   :  { %274 = vmatprep.subr.bf16.mxu0 %v306_v2 }
  0x3c   :  { %277 = vmatpush3.bf16.xpose.msk.msra.mxu0 %vm338_vm1, %v275_v26 }
  0x43   :  { %244 = vmatmul.mubr.msk.f32.vlgmr.msra.gmra.mrb[0].mxu0 %vm39_vm0, %v15_v27 }
 0x116   :  { %v157_v29 = vpop.f32.mrb[0].mxu0 }
 0x117   :  { %v158_v30 = vadd.f32 %v176_v28, %v157_v29  ;;  %v245_v31 = vpop.f32.mrb[1].mxu0 }
 0x119   :  { %161 = vst [vmem:[#allocation2] sm:$0xff] %v158_v30 }
 0x11a   :  { %293 = shalt.err (!%p290_p4)
}
 0x11b   :  { %s294_s24 = scalar_lea.hbm %s422_s3, 128 }
 0x11c   :  { %p295_p5 = scmp.ne.s32.totalorder %s422_s3, %s294_s24  ;;  %p298_p6 = scmp.lt.u32.totalorder %s294_s24, %s422_s3 }
 0x11e   :  { %p300_p7 = pnand %p298_p6, %p295_p5 }
 0x120   :  { %303 = shalt.err (!%p300_p7)
}
 0x121   :  { %171 = dma.vmem_to_hbm [thread:$0]  %s169_s22, 128, %s422_s3, [#allocation3]  }
 0x122   :  { %304 = dma.done.wait [#allocation3], 128  }
 0x123   :  { %305 = vsyncadd [#allocation3], 4294967168 }
 0x124   :  { %175 = vsyncpa [#allocation3], 1 }

</bundles_post_ra>
